<compile_context>
chip_gen: v7x
topology: tpu7x:2x2x1
jax: 0.10.0
libtpu: 0.0.40
codegen_flags: <defaults>
</compile_context>

<pallas_src>
import functools

import jax
import jax.numpy as jnp
from jax.experimental import pallas as pl
from jax.experimental.pallas import tpu as pltpu

K_IN = 784          # feature dim (28*28)
N_OUT = 10          # logits
N_PAD = 128         # lane-dense output width (slice back to 10 outside the kernel)
DEFAULT_TB = 1024   # batch tile; safe for v5e's 16 MiB scoped-VMEM default


def _round_up(x, m):
    return ((x + m - 1) // m) * m


def mlp_kernel(x_ref, w1_ref, b1_ref, w2_ref, b2_ref, w3_ref, b3_ref, o_ref):
    # x_ref: (TB, 784) f32 streamed tile; weights bf16 (VMEM-resident); biases f32.
    # All matmul accumulation is f32 on the MXU; cast to bf16 happens in-kernel.
    x = x_ref[...].astype(jnp.bfloat16)

    h1 = jnp.dot(x, w1_ref[...], preferred_element_type=jnp.float32) + b1_ref[...]
    h1 = jnp.maximum(h1, 0.0)

    h2 = jnp.dot(h1.astype(jnp.bfloat16), w2_ref[...],
                 preferred_element_type=jnp.float32) + b2_ref[...]
    h2 = jnp.maximum(h2, 0.0)

    out = jnp.dot(h2.astype(jnp.bfloat16), w3_ref[...],
                  preferred_element_type=jnp.float32) + b3_ref[...]
    o_ref[...] = out.astype(o_ref.dtype)          # (TB, 128) lane-dense f32 store


@functools.partial(jax.jit, static_argnames=("tb",))
def nn_forward(x, params, *, tb=DEFAULT_TB):
    """x: (B, 1, 28, 28) or any (B, ...) that flattens to (B, 784). Returns (B, 10) f32."""
    w1, b1, w2, b2, w3, b3 = params
    B = x.shape[0]

    # ---- glue: flatten only (free reshape).  x stays f32; the kernel casts per-tile.
    x2d = x.reshape(B, -1)
    assert x2d.shape[1] == K_IN

    # Weights: cast to bf16; pad layer-3 to a lane-dense N=128 output.
    w1b = w1.astype(jnp.bfloat16)
    w2b = w2.astype(jnp.bfloat16)
    w3p = jnp.pad(w3, ((0, 0), (0, N_PAD - N_OUT))).astype(jnp.bfloat16)
    b3p = jnp.pad(b3, ((0, 0), (0, N_PAD - N_OUT)))

    # ---- adaptive batch tiling: balance TB across tiles (multiple of 8 sublanes) so
    # padded zero-rows never dominate (e.g. B=1100 -> 2 tiles of 552, not 2048 rows).
    n_tiles = max(1, pl.cdiv(B, tb))
    TB = _round_up(pl.cdiv(B, n_tiles), 8)
    B_pad = n_tiles * TB
    if B_pad != B:
        x2d = jnp.pad(x2d, ((0, B_pad - B), (0, 0)))

    grid = (n_tiles,)

    def resident(a):
        # Constant index_map -> block never changes -> stays VMEM-resident across the grid.
        return pl.BlockSpec(a.shape, lambda i: (0,) * a.ndim)

    flops = 2 * B_pad * (K_IN * 256 + 256 * 64 + 64 * N_PAD)
    bytes_accessed = (
        x2d.size * 4                                        # f32 x stream
        + (w1b.size + w2b.size + w3p.size) * 2              # bf16 weights (read once)
        + (b1.size + b2.size + b3p.size) * 4                # f32 biases
        + B_pad * N_PAD * 4                                 # f32 lane-dense output
    )

    out = pl.pallas_call(
        mlp_kernel,
        out_shape=jax.ShapeDtypeStruct((B_pad, N_PAD), jnp.float32),
        grid=grid,
        in_specs=[
            pl.BlockSpec((TB, K_IN), lambda i: (i, 0)),     # streamed, double-buffered
            resident(w1b), resident(b1),
            resident(w2b), resident(b2),
            resident(w3p), resident(b3p),
        ],
        out_specs=pl.BlockSpec((TB, N_PAD), lambda i: (i, 0)),
        compiler_params=pltpu.CompilerParams(
            dimension_semantics=("parallel",),              # megacore split on v7x
        ),
        cost_estimate=pl.CostEstimate(
            flops=flops, transcendentals=0, bytes_accessed=bytes_accessed
        ),
    )(x2d, w1b, b1, w2b, b2, w3p, b3p)

    return out[:B, :N_OUT]   # drop padded tail rows and padded output lanes


def init_params(key):
    """Deterministic init matching nn.Linear shapes (weights stored transposed: (in, out))."""
    k1, k2, k3, k4, k5, k6 = jax.random.split(key, 6)

    def linear(kw, kb, fan_in, fan_out):
        bound = 1.0 / jnp.sqrt(fan_in)
        w = jax.random.uniform(kw, (fan_in, fan_out), jnp.float32, -bound, bound)
        b = jax.random.uniform(kb, (1, fan_out), jnp.float32, -bound, bound)
        return w, b

    w1, b1 = linear(k1, k2, 784, 256)
    w2, b2 = linear(k3, k4, 256, 64)
    w3, b3 = linear(k5, k6, 64, 10)
    return (w1, b1, w2, b2, w3, b3)


def nn_reference(x, params, *, bf16=True):
    """Pure-JAX reference. bf16=True mirrors the kernel's bf16-input / f32-accum matmuls."""
    w1, b1, w2, b2, w3, b3 = params
    cast = (lambda a: a.astype(jnp.bfloat16)) if bf16 else (lambda a: a)
    h = x.reshape(x.shape[0], -1)
    h = jnp.maximum(jnp.dot(cast(h), cast(w1), preferred_element_type=jnp.float32) + b1, 0.0)
    h = jnp.maximum(jnp.dot(cast(h), cast(w2), preferred_element_type=jnp.float32) + b2, 0.0)
    return jnp.dot(cast(h), cast(w3), preferred_element_type=jnp.float32) + b3


if __name__ == "__main__":
    key = jax.random.PRNGKey(0)
    kx, kp = jax.random.split(key)

    B = 8
    x = jax.random.normal(kx, (B, 1, 28, 28), jnp.float32)  # NCHW MNIST-like input
    params = init_params(kp)

    out = nn_forward(x, params)
    out = jax.block_until_ready(out)
    assert out.shape == (B, 10)

    # Compare against a bf16-input / f32-accum reference (same numerics as the kernel).
    ref_bf16 = nn_reference(x, params, bf16=True)
    assert jnp.allclose(out, ref_bf16, atol=1e-2, rtol=1e-2), "mismatch vs bf16 reference"

    # Loose sanity check against the full-f32 reference (bf16 rounding only).
    ref_f32 = nn_reference(x, params, bf16=False)
    assert jnp.allclose(out, ref_f32, atol=1e-1, rtol=1e-1), "mismatch vs f32 reference"

    print("KERNEL_OK")
</pallas_src>

<mosaic_0001>
module attributes {stable_mosaic.version = 11 : i64} {
  func.func @mlp_kernel(%arg0: i32, %arg1: memref<8x784xf32, #tpu.memory_space<vmem>>, %arg2: memref<784x256xbf16, #tpu.memory_space<vmem>>, %arg3: memref<1x256xf32, #tpu.memory_space<vmem>>, %arg4: memref<256x64xbf16, #tpu.memory_space<vmem>>, %arg5: memref<1x64xf32, #tpu.memory_space<vmem>>, %arg6: memref<64x128xbf16, #tpu.memory_space<vmem>>, %arg7: memref<1x128xf32, #tpu.memory_space<vmem>>, %arg8: memref<8x128xf32, #tpu.memory_space<vmem>>) attributes {dimension_semantics = [#tpu.dimension_semantics<parallel>], iteration_bounds = array<i64: 1>, scalar_prefetch = 0 : i64, scratch_operands = 0 : i64, tpu.core_type = #tpu.core_type<tc>, window_params = [{transform_indices = @transform_0, window_bounds = array<i64: 8, 784>}, {pipeline_mode = #tpu.pipeline_mode<synchronous>, transform_indices = @transform_1, window_bounds = array<i64: 784, 256>}, {pipeline_mode = #tpu.pipeline_mode<synchronous>, transform_indices = @transform_2, window_bounds = array<i64: 1, 256>}, {pipeline_mode = #tpu.pipeline_mode<synchronous>, transform_indices = @transform_3, window_bounds = array<i64: 256, 64>}, {pipeline_mode = #tpu.pipeline_mode<synchronous>, transform_indices = @transform_4, window_bounds = array<i64: 1, 64>}, {pipeline_mode = #tpu.pipeline_mode<synchronous>, transform_indices = @transform_5, window_bounds = array<i64: 64, 128>}, {pipeline_mode = #tpu.pipeline_mode<synchronous>, transform_indices = @transform_6, window_bounds = array<i64: 1, 128>}, {transform_indices = @transform_7, window_bounds = array<i64: 8, 128>}]} {
    %c0 = arith.constant 0 : index
    %c0_0 = arith.constant 0 : index
    %0 = vector.load %arg1[%c0, %c0_0] : memref<8x784xf32, #tpu.memory_space<vmem>>, vector<8x784xf32>
    %1 = arith.truncf %0 : vector<8x784xf32> to vector<8x784xbf16>
    %c0_1 = arith.constant 0 : index
    %c0_2 = arith.constant 0 : index
    %2 = vector.load %arg2[%c0_1, %c0_2] : memref<784x256xbf16, #tpu.memory_space<vmem>>, vector<784x256xbf16>
    %cst = arith.constant dense<0.000000e+00> : vector<8x256xf32>
    %3 = tpu.matmul %1, %2, %cst {dimension_numbers = #tpu.dot_dimension_numbers<[1], [0], [0], [1], [0, 0, 1, 1], [], []>} : vector<8x784xbf16>, vector<784x256xbf16>, vector<8x256xf32> -> vector<8x256xf32>
    %c0_3 = arith.constant 0 : index
    %c0_4 = arith.constant 0 : index
    %4 = vector.load %arg3[%c0_3, %c0_4] : memref<1x256xf32, #tpu.memory_space<vmem>>, vector<1x256xf32>
    %5 = vector.broadcast %4 : vector<1x256xf32> to vector<8x256xf32>
    %6 = arith.addf %3, %5 : vector<8x256xf32>
    %cst_5 = arith.constant 0.000000e+00 : f32
    %7 = vector.broadcast %cst_5 : f32 to vector<8x256xf32>
    %8 = arith.maximumf %6, %7 : vector<8x256xf32>
    %9 = arith.truncf %8 : vector<8x256xf32> to vector<8x256xbf16>
    %c0_6 = arith.constant 0 : index
    %c0_7 = arith.constant 0 : index
    %10 = vector.load %arg4[%c0_6, %c0_7] : memref<256x64xbf16, #tpu.memory_space<vmem>>, vector<256x64xbf16>
    %cst_8 = arith.constant dense<0.000000e+00> : vector<8x64xf32>
    %11 = tpu.matmul %9, %10, %cst_8 {dimension_numbers = #tpu.dot_dimension_numbers<[1], [0], [0], [1], [0, 0, 1, 1], [], []>} : vector<8x256xbf16>, vector<256x64xbf16>, vector<8x64xf32> -> vector<8x64xf32>
    %c0_9 = arith.constant 0 : index
    %c0_10 = arith.constant 0 : index
    %12 = vector.load %arg5[%c0_9, %c0_10] : memref<1x64xf32, #tpu.memory_space<vmem>>, vector<1x64xf32>
    %13 = vector.broadcast %12 : vector<1x64xf32> to vector<8x64xf32>
    %14 = arith.addf %11, %13 : vector<8x64xf32>
    %cst_11 = arith.constant 0.000000e+00 : f32
    %15 = vector.broadcast %cst_11 : f32 to vector<8x64xf32>
    %16 = arith.maximumf %14, %15 : vector<8x64xf32>
    %17 = arith.truncf %16 : vector<8x64xf32> to vector<8x64xbf16>
    %c0_12 = arith.constant 0 : index
    %c0_13 = arith.constant 0 : index
    %18 = vector.load %arg6[%c0_12, %c0_13] : memref<64x128xbf16, #tpu.memory_space<vmem>>, vector<64x128xbf16>
    %cst_14 = arith.constant dense<0.000000e+00> : vector<8x128xf32>
    %19 = tpu.matmul %17, %18, %cst_14 {dimension_numbers = #tpu.dot_dimension_numbers<[1], [0], [0], [1], [0, 0, 1, 1], [], []>} : vector<8x64xbf16>, vector<64x128xbf16>, vector<8x128xf32> -> vector<8x128xf32>
    %c0_15 = arith.constant 0 : index
    %c0_16 = arith.constant 0 : index
    %20 = vector.load %arg7[%c0_15, %c0_16] : memref<1x128xf32, #tpu.memory_space<vmem>>, vector<1x128xf32>
    %21 = vector.broadcast %20 : vector<1x128xf32> to vector<8x128xf32>
    %22 = arith.addf %19, %21 : vector<8x128xf32>
    %c0_17 = arith.constant 0 : index
    %c0_18 = arith.constant 0 : index
    %23 = vector.load %arg8[%c0_17, %c0_18] : memref<8x128xf32, #tpu.memory_space<vmem>>, vector<8x128xf32>
    tpu.vector_store %arg8[%c0_17, %c0_18], %22 {strides = array<i32>} : memref<8x128xf32, #tpu.memory_space<vmem>>, vector<8x128xf32>,
    return
  }
  func.func @transform_0(%arg0: i32) -> (i32, i32) {
    %c0_i32 = arith.constant 0 : i32
    %c0_i32_0 = arith.constant 0 : i32
    return %arg0, %c0_i32 : i32, i32
  }
  func.func @transform_1(%arg0: i32) -> (i32, i32) {
    %c0_i32 = arith.constant 0 : i32
    %c0_i32_0 = arith.constant 0 : i32
    %c0_i32_1 = arith.constant 0 : i32
    return %c0_i32, %c0_i32_0 : i32, i32
  }
  func.func @transform_2(%arg0: i32) -> (i32, i32) {
    %c0_i32 = arith.constant 0 : i32
    %c0_i32_0 = arith.constant 0 : i32
    %c0_i32_1 = arith.constant 0 : i32
    return %c0_i32, %c0_i32_0 : i32, i32
  }
  func.func @transform_3(%arg0: i32) -> (i32, i32) {
    %c0_i32 = arith.constant 0 : i32
    %c0_i32_0 = arith.constant 0 : i32
    %c0_i32_1 = arith.constant 0 : i32
    return %c0_i32, %c0_i32_0 : i32, i32
  }
  func.func @transform_4(%arg0: i32) -> (i32, i32) {
    %c0_i32 = arith.constant 0 : i32
    %c0_i32_0 = arith.constant 0 : i32
    %c0_i32_1 = arith.constant 0 : i32
    return %c0_i32, %c0_i32_0 : i32, i32
  }
  func.func @transform_5(%arg0: i32) -> (i32, i32) {
    %c0_i32 = arith.constant 0 : i32
    %c0_i32_0 = arith.constant 0 : i32
    %c0_i32_1 = arith.constant 0 : i32
    return %c0_i32, %c0_i32_0 : i32, i32
  }
  func.func @transform_6(%arg0: i32) -> (i32, i32) {
    %c0_i32 = arith.constant 0 : i32
    %c0_i32_0 = arith.constant 0 : i32
    %c0_i32_1 = arith.constant 0 : i32
    return %c0_i32, %c0_i32_0 : i32, i32
  }
  func.func @transform_7(%arg0: i32) -> (i32, i32) {
    %c0_i32 = arith.constant 0 : i32
    %c0_i32_0 = arith.constant 0 : i32
    return %arg0, %c0_i32 : i32, i32
  }
}

</mosaic_0001>

<bundles_post_ra>
// kernel: nn_forward.1
= control target key start
LH: loop header
LB: loop body
LE: loop exit
PB: predicated region body
PF: predicated region fallthrough
CT: control target
= control target key end

     0   :  { %s1895_s0 = inlined_call_operand.vmem [shape: f32[8,784], index: 0, kind: input, shape index: {}]   ;;  %s1896_s1 = inlined_call_operand.vmem [shape: bf16[784,256], index: 1, kind: input, shape index: {}]   ;;  %s1897_s2 = inlined_call_operand.vmem [shape: f32[1,256], index: 2, kind: input, shape index: {}]   ;;  %s1898_s3 = inlined_call_operand.vmem [shape: bf16[256,64], index: 3, kind: input, shape index: {}]   ;;  %s1899_s4 = inlined_call_operand.vmem [shape: f32[1,64], index: 4, kind: input, shape index: {}]   ;;  %s1900_s5 = inlined_call_operand.vmem [shape: bf16[64,128], index: 5, kind: input, shape index: {}]   ;;  %s1901_s6 = inlined_call_operand.vmem [shape: f32[1,128], index: 6, kind: input, shape index: {}]   ;;  %s1902_s7 = inlined_call_operand.hbm [shape: f32[8,128], index: 7, kind: output, shape index: {}]  }
   0x1   :  { %v1264_v0 = vld [vmem:[%s1896_s1 + $0x104] ss:$8 sps:$4 sm:$0xff]   ;;  %v1266_v1 = vld [vmem:[%s1896_s1 + $0x100] ss:$8 sps:$4 sm:$0xff]   ;;  %v1267_v2 = vld [vmem:[%s1896_s1 + $0x114] ss:$8 sps:$4 sm:$0xff]  }
   0x2   :  { %687 = vmatprep.subr.bf16.mxu0 %v1264_v0  ;;  %v1269_v3 = vld [vmem:[%s1896_s1 + $0x110] ss:$8 sps:$4 sm:$0xff]   ;;  %v1270_v4 = vld [vmem:[%s1896_s1 + $0x124] ss:$8 sps:$4 sm:$0xff]   ;;  %v1272_v5 = vld [vmem:[%s1896_s1 + $0x120] ss:$8 sps:$4 sm:$0xff]  }
   0x3   :  { %688 = vmatpush1.bf16.msra.mxu0 %v1266_v1  ;;  %v1273_v6 = vld [vmem:[%s1896_s1 + $0x134] ss:$8 sps:$4 sm:$0xff]   ;;  %v1275_v7 = vld [vmem:[%s1896_s1 + $0x130] ss:$8 sps:$4 sm:$0xff]   ;;  %v1276_v8 = vld [vmem:[%s1896_s1 + $0x144] ss:$8 sps:$4 sm:$0xff]  }
   0x4   :  { %689 = vmatprep.subr.bf16.mxu0 %v1267_v2  ;;  %v1278_v9 = vld [vmem:[%s1896_s1 + $0x140] ss:$8 sps:$4 sm:$0xff]   ;;  %v1279_v10 = vld [vmem:[%s1896_s1 + $0x154] ss:$8 sps:$4 sm:$0xff]   ;;  %v1281_v11 = vld [vmem:[%s1896_s1 + $0x150] ss:$8 sps:$4 sm:$0xff]  }
   0x5   :  { %v1306_v12 = vld [vmem:[%s1896_s1 + $0x4] ss:$8 sps:$4 sm:$0xff]   ;;  %v1308_v13 = vld [vmem:[%s1896_s1] ss:$8 sps:$4 sm:$0xff]   ;;  %v1312_v15 = vld [vmem:[%s1896_s1 + $0x14] ss:$8 sps:$4 sm:$0xff]  }
   0x6   :  { %v1282_v14 = vld [vmem:[%s1896_s1 + $0x164] ss:$8 sps:$4 sm:$0xff]   ;;  %646 = vmatprep.subr.bf16.mxu1 %v1306_v12  ;;  %v1314_v16 = vld [vmem:[%s1896_s1 + $0x10] ss:$8 sps:$4 sm:$0xff]   ;;  %v1284_v17 = vld [vmem:[%s1896_s1 + $0x160] ss:$8 sps:$4 sm:$0xff]  }
   0x7   :  { %690 = vmatpush1.bf16.msra.mxu0 %v1269_v3  ;;  %647 = vmatpush1.bf16.msra.mxu1 %v1308_v13  ;;  %v1285_v18 = vld [vmem:[%s1896_s1 + $0x174] ss:$8 sps:$4 sm:$0xff]   ;;  %v1318_v19 = vld [vmem:[%s1896_s1 + $0x24] ss:$8 sps:$4 sm:$0xff]   ;;  %v1320_v21 = vld [vmem:[%s1896_s1 + $0x20] ss:$8 sps:$4 sm:$0xff]  }
   0x8   :  { %691 = vmatprep.subr.bf16.mxu0 %v1270_v4  ;;  %648 = vmatprep.subr.bf16.mxu1 %v1312_v15  ;;  %v31_v20 = vld [vmem:[%s1895_s0 + $0x18] sm:$0xff]  ;;  %v1288_v24 = vld [vmem:[%s1896_s1 + $0x184] ss:$8 sps:$4 sm:$0xff]   ;;  %v1290_v26 = vld [vmem:[%s1896_s1 + $0x180] ss:$8 sps:$4 sm:$0xff]  }
   0x9   :  { %v38_v22 = vpack.c.bf16 %v31_v20, %v31_v20  ;;  %v1287_v23 = vld [vmem:[%s1896_s1 + $0x170] ss:$8 sps:$4 sm:$0xff]   ;;  %v1324_v25 = vld [vmem:[%s1896_s1 + $0x34] ss:$8 sps:$4 sm:$0xff]   ;;  %v1330_v28 = vld [vmem:[%s1896_s1 + $0x44] ss:$8 sps:$4 sm:$0xff]  }
   0xa   :  { %v1326_v27 = vld [vmem:[%s1896_s1 + $0x30] ss:$8 sps:$4 sm:$0xff]   ;;  %v1291_v29 = vld [vmem:[%s1896_s1 + $0x194] ss:$8 sps:$4 sm:$0xff]   ;;  %v1332_v31 = vld [vmem:[%s1896_s1 + $0x40] ss:$8 sps:$4 sm:$0xff]  }
   0xb   :  { %692 = vmatpush1.bf16.msra.mxu0 %v1272_v5  ;;  %649 = vmatpush1.bf16.msra.mxu1 %v1314_v16  ;;  %v1293_v30 = vld [vmem:[%s1896_s1 + $0x190] ss:$8 sps:$4 sm:$0xff]   ;;  %v1336_v32 = vld [vmem:[%s1896_s1 + $0x54] ss:$8 sps:$4 sm:$0xff]   ;;  %v1294_v33 = vld [vmem:[%s1896_s1 + $0x1a4] ss:$8 sps:$4 sm:$0xff]  }
   0xc   :  { %693 = vmatprep.subr.bf16.mxu0 %v1273_v6  ;;  %650 = vmatprep.subr.bf16.mxu1 %v1318_v19  ;;  %v1296_v34 = vld [vmem:[%s1896_s1 + $0x1a0] ss:$8 sps:$4 sm:$0xff]   ;;  %v1338_v35 = vld [vmem:[%s1896_s1 + $0x50] ss:$8 sps:$4 sm:$0xff]   ;;  %v1342_v36 = vld [vmem:[%s1896_s1 + $0x64] ss:$8 sps:$4 sm:$0xff]  }
   0xd   :  { %719 = vmatprep.mubr.bf16.mxu0 %v38_v22  ;;  %v1297_v37 = vld [vmem:[%s1896_s1 + $0x1b4] ss:$8 sps:$4 sm:$0xff]   ;;  %v1299_v38 = vld [vmem:[%s1896_s1 + $0x1b0] ss:$8 sps:$4 sm:$0xff]   ;;  %v1344_v39 = vld [vmem:[%s1896_s1 + $0x60] ss:$8 sps:$4 sm:$0xff]  }
   0xe   :  { %v1348_v40 = vld [vmem:[%s1896_s1 + $0x74] ss:$8 sps:$4 sm:$0xff]   ;;  %v1300_v41 = vld [vmem:[%s1896_s1 + $0x1c4] ss:$8 sps:$4 sm:$0xff]   ;;  %v1302_v42 = vld [vmem:[%s1896_s1 + $0x1c0] ss:$8 sps:$4 sm:$0xff]  }
   0xf   :  { %694 = vmatpush1.bf16.msra.mxu0 %v1275_v7  ;;  %651 = vmatpush1.bf16.msra.mxu1 %v1320_v21  ;;  %v1350_v43 = vld [vmem:[%s1896_s1 + $0x70] ss:$8 sps:$4 sm:$0xff]   ;;  %v1354_v44 = vld [vmem:[%s1896_s1 + $0x84] ss:$8 sps:$4 sm:$0xff]   ;;  %v1303_v45 = vld [vmem:[%s1896_s1 + $0x1d4] ss:$8 sps:$4 sm:$0xff]  }
  0x10   :  { %695 = vmatprep.subr.bf16.mxu0 %v1276_v8  ;;  %652 = vmatprep.subr.bf16.mxu1 %v1324_v25  ;;  %v1305_v46 = vld [vmem:[%s1896_s1 + $0x1d0] ss:$8 sps:$4 sm:$0xff]   ;;  %v1356_v47 = vld [vmem:[%s1896_s1 + $0x80] ss:$8 sps:$4 sm:$0xff]   ;;  %v1360_v48 = vld [vmem:[%s1896_s1 + $0x94] ss:$8 sps:$4 sm:$0xff]  }
  0x11   :  { %v1309_v49 = vld [vmem:[%s1896_s1 + $0x1e4] ss:$8 sps:$4 sm:$0xff]   ;;  %v1311_v50 = vld [vmem:[%s1896_s1 + $0x1e0] ss:$8 sps:$4 sm:$0xff]   ;;  %v1362_v51 = vld [vmem:[%s1896_s1 + $0x90] ss:$8 sps:$4 sm:$0xff]  }
  0x12   :  { %v1366_v52 = vld [vmem:[%s1896_s1 + $0xa4] ss:$8 sps:$4 sm:$0xff]   ;;  %v1315_v53 = vld [vmem:[%s1896_s1 + $0x1f4] ss:$8 sps:$4 sm:$0xff]   ;;  %v1317_v54 = vld [vmem:[%s1896_s1 + $0x1f0] ss:$8 sps:$4 sm:$0xff]  }
  0x13   :  { %696 = vmatpush1.bf16.msra.mxu0 %v1278_v9  ;;  %653 = vmatpush1.bf16.msra.mxu1 %v1326_v27  ;;  %v30_v55 = vld [vmem:[%s1895_s0 + $0x10] sm:$0xff]  ;;  %v1368_v56 = vld [vmem:[%s1896_s1 + $0xa0] ss:$8 sps:$4 sm:$0xff]   ;;  %v1323_v58 = vld [vmem:[%s1896_s1 + $0x204] ss:$8 sps:$4 sm:$0xff]  }
  0x14   :  { %697 = vmatprep.subr.bf16.mxu0 %v1279_v10  ;;  %654 = vmatprep.subr.bf16.mxu1 %v1330_v28  ;;  %v1372_v57 = vld [vmem:[%s1896_s1 + $0xb4] ss:$8 sps:$4 sm:$0xff]   ;;  %v37_v59 = vpack.c.bf16 %v30_v55, %v30_v55  ;;  %v1374_v60 = vld [vmem:[%s1896_s1 + $0xb0] ss:$8 sps:$4 sm:$0xff]   ;;  %v29_v61 = vld [vmem:[%s1895_s0 + $0x8] sm:$0xff] }
  0x15   :  { %v1321_v62 = vld [vmem:[%s1896_s1 + $0x200] ss:$8 sps:$4 sm:$0xff]   ;;  %v1378_v63 = vld [vmem:[%s1896_s1 + $0xc4] ss:$8 sps:$4 sm:$0xff]   ;;  %v36_v0 = vpack.c.bf16 %v29_v61, %v29_v61  ;;  %v1329_v1 = vld [vmem:[%s1896_s1 + $0x214] ss:$8 sps:$4 sm:$0xff]  }
  0x16   :  { %v1380_v2 = vld [vmem:[%s1896_s1 + $0xc0] ss:$8 sps:$4 sm:$0xff]   ;;  %v1327_v4 = vld [vmem:[%s1896_s1 + $0x210] ss:$8 sps:$4 sm:$0xff]   ;;  %v1384_v5 = vld [vmem:[%s1896_s1 + $0xd4] ss:$8 sps:$4 sm:$0xff]  }
  0x17   :  { %698 = vmatpush1.bf16.msra.mxu0 %v1281_v11  ;;  %655 = vmatpush1.bf16.msra.mxu1 %v1332_v31  ;;  %v33_v3 = vld [vmem:[%s1895_s0 + $0x28] sm:$0xff]  ;;  %v1386_v9 = vld [vmem:[%s1896_s1 + $0xd0] ss:$8 sps:$4 sm:$0xff]   ;;  %v1341_v11 = vld [vmem:[%s1896_s1 + $0x234] ss:$8 sps:$4 sm:$0xff]  }
  0x18   :  { %699 = vmatprep.subr.bf16.mxu0 %v1282_v14  ;;  %656 = vmatprep.subr.bf16.mxu1 %v1336_v32  ;;  %v40_v6 = vpack.c.bf16 %v33_v3, %v33_v3  ;;  %v1335_v7 = vld [vmem:[%s1896_s1 + $0x224] ss:$8 sps:$4 sm:$0xff]   ;;  %v1333_v8 = vld [vmem:[%s1896_s1 + $0x220] ss:$8 sps:$4 sm:$0xff]   ;;  %v1339_v12 = vld [vmem:[%s1896_s1 + $0x230] ss:$8 sps:$4 sm:$0xff]  }
  0x19   :  { %678 = vmatprep.mubr.bf16.mxu1 %v36_v0  ;;  %v1390_v10 = vld [vmem:[%s1896_s1 + $0xe4] ss:$8 sps:$4 sm:$0xff]   ;;  %v1392_v13 = vld [vmem:[%s1896_s1 + $0xe0] ss:$8 sps:$4 sm:$0xff]   ;;  %v1396_v14 = vld [vmem:[%s1896_s1 + $0xf4] ss:$8 sps:$4 sm:$0xff]  }
  0x1a   :  { %v1347_v15 = vld [vmem:[%s1896_s1 + $0x244] ss:$8 sps:$4 sm:$0xff]   ;;  %v1398_v16 = vld [vmem:[%s1896_s1 + $0xf0] ss:$8 sps:$4 sm:$0xff]   ;;  %v1353_v20 = vld [vmem:[%s1896_s1 + $0x254] ss:$8 sps:$4 sm:$0xff]  }
  0x1b   :  { %700 = vmatpush1.bf16.msra.mxu0 %v1284_v17  ;;  %657 = vmatpush1.bf16.msra.mxu1 %v1338_v35  ;;  %v28_v17 = vld [vmem:[%s1895_s0] sm:$0xff]  ;;  %v1351_v22 = vld [vmem:[%s1896_s1 + $0x250] ss:$8 sps:$4 sm:$0xff]  }
  0x1c   :  { %701 = vmatprep.subr.bf16.mxu0 %v1285_v18  ;;  %658 = vmatprep.subr.bf16.mxu1 %v1342_v36  ;;  %v1345_v18 = vld [vmem:[%s1896_s1 + $0x240] ss:$8 sps:$4 sm:$0xff]   ;;  %v1407_v19 = vld [vmem:[%s1896_s1 + $0x304] ss:$8 sps:$4 sm:$0xff]  }
  0x1d   :  { %v1405_v21 = vld [vmem:[%s1896_s1 + $0x300] ss:$8 sps:$4 sm:$0xff]  }
  0x1f   :  { %702 = vmatpush1.bf16.msra.mxu0 %v1287_v23  ;;  %659 = vmatpush1.bf16.msra.mxu1 %v1344_v39  ;;  %v35_v23 = vpack.c.bf16 %v28_v17, %v28_v17 }
  0x20   :  { %703 = vmatprep.subr.bf16.mxu0 %v1288_v24  ;;  %660 = vmatprep.subr.bf16.mxu1 %v1348_v40  ;;  %v1411_v24 = vld [vmem:[%s1898_s3 + $0x40] sm:$0xff]  }
  0x23   :  { %704 = vmatpush1.bf16.msra.mxu0 %v1290_v26  ;;  %661 = vmatpush1.bf16.msra.mxu1 %v1350_v43 }
  0x24   :  { %705 = vmatprep.subr.bf16.mxu0 %v1291_v29  ;;  %662 = vmatprep.subr.bf16.mxu1 %v1354_v44 }
  0x27   :  { %706 = vmatpush1.bf16.msra.mxu0 %v1293_v30  ;;  %663 = vmatpush1.bf16.msra.mxu1 %v1356_v47 }
  0x28   :  { %707 = vmatprep.subr.bf16.mxu0 %v1294_v33  ;;  %664 = vmatprep.subr.bf16.mxu1 %v1360_v48 }
  0x2b   :  { %708 = vmatpush1.bf16.msra.mxu0 %v1296_v34  ;;  %665 = vmatpush1.bf16.msra.mxu1 %v1362_v51 }
  0x2c   :  { %709 = vmatprep.subr.bf16.mxu0 %v1297_v37  ;;  %666 = vmatprep.subr.bf16.mxu1 %v1366_v52 }
  0x2f   :  { %710 = vmatpush1.bf16.msra.mxu0 %v1299_v38  ;;  %667 = vmatpush1.bf16.msra.mxu1 %v1368_v56 }
  0x30   :  { %711 = vmatprep.subr.bf16.mxu0 %v1300_v41  ;;  %668 = vmatprep.subr.bf16.mxu1 %v1372_v57 }
  0x33   :  { %712 = vmatpush1.bf16.msra.mxu0 %v1302_v42  ;;  %669 = vmatpush1.bf16.msra.mxu1 %v1374_v60 }
  0x34   :  { %713 = vmatprep.subr.bf16.mxu0 %v1303_v45  ;;  %670 = vmatprep.subr.bf16.mxu1 %v1378_v63 }
  0x37   :  { %714 = vmatpush1.bf16.msra.mxu0 %v1305_v46  ;;  %671 = vmatpush1.bf16.msra.mxu1 %v1380_v2 }
  0x38   :  { %715 = vmatprep.subr.bf16.mxu0 %v1309_v49  ;;  %672 = vmatprep.subr.bf16.mxu1 %v1384_v5 }
  0x3b   :  { %716 = vmatpush1.bf16.msra.mxu0 %v1311_v50  ;;  %673 = vmatpush1.bf16.msra.mxu1 %v1386_v9 }
  0x3c   :  { %717 = vmatprep.subr.bf16.mxu0 %v1315_v53  ;;  %674 = vmatprep.subr.bf16.mxu1 %v1390_v10 }
  0x3f   :  { %718 = vmatpush1.bf16.msra.mxu0 %v1317_v54  ;;  %675 = vmatpush1.bf16.msra.mxu1 %v1392_v13 }
  0x40   :  { %728 = vmatprep.subr.bf16.mxu0 %v1323_v58  ;;  %676 = vmatprep.subr.bf16.mxu1 %v1396_v14 }
  0x42   :  { %720 = vmatmul.mubr.bf16.vlgmr.msra.gmra.mrb[0].mxu0 %v37_v59 }
  0x43   :  { %729 = vmatpush1.bf16.msra.mxu0 %v1321_v62  ;;  %760 = vmatprep.mubr.bf16.mxu0 %v40_v6 }
  0x44   :  { %730 = vmatprep.subr.bf16.mxu0 %v1329_v1  ;;  %677 = vmatpush1.bf16.msra.mxu1 %v1398_v16 }
  0x45   :  { %769 = vmatprep.subr.bf16.mxu1 %v1407_v19 }
  0x47   :  { %731 = vmatpush1.bf16.msra.mxu0 %v1327_v4 }
  0x48   :  { %732 = vmatprep.subr.bf16.mxu0 %v1335_v7 }
  0x4b   :  { %733 = vmatpush1.bf16.msra.mxu0 %v1333_v8 }
  0x4c   :  { %734 = vmatprep.subr.bf16.mxu0 %v1341_v11 }
  0x4f   :  { %735 = vmatpush1.bf16.msra.mxu0 %v1339_v12 }
  0x50   :  { %736 = vmatprep.subr.bf16.mxu0 %v1347_v15 }
  0x53   :  { %737 = vmatpush1.bf16.msra.mxu0 %v1345_v18 }
  0x54   :  { %12 = vsyncpa [#allocation3], 0  ;;  %738 = vmatprep.subr.bf16.mxu0 %v1353_v20  ;;  %v1359_v25 = vld [vmem:[%s1896_s1 + $0x264] ss:$8 sps:$4 sm:$0xff]   ;;  %679 = vmatmul.mubr.bf16.vlgmr.msra.gmra.mrb[0].mxu1 %v35_v23  ;;  %v1455_v26 = vmov 0   ;;  %v34_v27 = vld [vmem:[%s1895_s0 + $0x30] sm:$0xff]  ;;  %v142_v10 = vlaneseq }
  0x55   :  { %770 = vmatpush1.bf16.msra.mxu1 %v1405_v21  ;;  %801 = vmatprep.mubr.bf16.mxu1 %v1455_v26  ;;  %v1357_v28 = vld [vmem:[%s1896_s1 + $0x260] ss:$8 sps:$4 sm:$0xff]   ;;  %v1365_v29 = vld [vmem:[%s1896_s1 + $0x274] ss:$8 sps:$4 sm:$0xff]   ;;  %v41_v30 = vpack.c.bf16 %v34_v27, %v34_v27  ;;  %vm642_vm0 = vcmask 130048   ;;  %v1456_v1 = vmov 0.0  }
  0x56   :  { %1211 = vmatprep.subr.bf16.mxu1 %v1411_v24  ;;  %v1412_v31 = vld [vmem:[%s1898_s3] sm:$0xff]   ;;  %v1363_v32 = vld [vmem:[%s1896_s1 + $0x270] ss:$8 sps:$4 sm:$0xff]   ;;  %v1413_v33 = vld [vmem:[%s1898_s3 + $0x48] sm:$0xff]   ;;  %v143_v11 = vshrl.u32 %v142_v10, 7  ;;  %vm1457_vm1 = vmmov 0  }
  0x57   :  { %739 = vmatpush1.bf16.msra.mxu0 %v1351_v22  ;;  %v1371_v34 = vld [vmem:[%s1896_s1 + $0x284] ss:$8 sps:$4 sm:$0xff]   ;;  %v1369_v36 = vld [vmem:[%s1896_s1 + $0x280] ss:$8 sps:$4 sm:$0xff]   ;;  %v1415_v37 = vld [vmem:[%s1898_s3 + $0x50] sm:$0xff]   ;;  %vm1030_vm2 = vcmask 523264  }
  0x58   :  { %740 = vmatprep.subr.bf16.mxu0 %v1359_v25  ;;  %v1414_v35 = vld [vmem:[%s1898_s3 + $0x8] sm:$0xff]   ;;  %v1377_v38 = vld [vmem:[%s1896_s1 + $0x294] ss:$8 sps:$4 sm:$0xff]   ;;  %v1375_v40 = vld [vmem:[%s1896_s1 + $0x290] ss:$8 sps:$4 sm:$0xff]   ;;  %v144_v12 = vsub.s32 0, %v143_v11 }
  0x59   :  { %v1416_v39 = vld [vmem:[%s1898_s3 + $0x10] sm:$0xff]   ;;  %v1383_v41 = vld [vmem:[%s1896_s1 + $0x2a4] ss:$8 sps:$4 sm:$0xff]   ;;  %v1381_v42 = vld [vmem:[%s1896_s1 + $0x2a0] ss:$8 sps:$4 sm:$0xff]   ;;  %v148_v14 = vsub.s32 1, %v143_v11 }
  0x5a   :  { %v1389_v43 = vld [vmem:[%s1896_s1 + $0x2b4] ss:$8 sps:$4 sm:$0xff]   ;;  %v1387_v44 = vld [vmem:[%s1896_s1 + $0x2b0] ss:$8 sps:$4 sm:$0xff]   ;;  %v1395_v45 = vld [vmem:[%s1896_s1 + $0x2c4] ss:$8 sps:$4 sm:$0xff]  }
  0x5b   :  { %741 = vmatpush1.bf16.msra.mxu0 %v1357_v28  ;;  %v1393_v46 = vld [vmem:[%s1896_s1 + $0x2c0] ss:$8 sps:$4 sm:$0xff]   ;;  %v1401_v47 = vld [vmem:[%s1896_s1 + $0x2d4] ss:$8 sps:$4 sm:$0xff]   ;;  %v1399_v48 = vld [vmem:[%s1896_s1 + $0x2d0] ss:$8 sps:$4 sm:$0xff]  }
  0x5c   :  { %742 = vmatprep.subr.bf16.mxu0 %v1365_v29  ;;  %1187 = vmatmul.mubr.msk.bf16.vlgmr.msra.gmra.mrb[4].mxu1 %vm642_vm0, %v41_v30  ;;  %v1404_v49 = vld [vmem:[%s1896_s1 + $0x2e4] ss:$8 sps:$4 sm:$0xff]   ;;  %v1402_v50 = vld [vmem:[%s1896_s1 + $0x2e0] ss:$8 sps:$4 sm:$0xff]   ;;  %v1410_v51 = vld [vmem:[%s1896_s1 + $0x2f4] ss:$8 sps:$4 sm:$0xff]  }
  0x5d   :  { %1212 = vmatpush3.bf16.msra.mxu1 %v1412_v31  ;;  %v1408_v52 = vld [vmem:[%s1896_s1 + $0x2f0] ss:$8 sps:$4 sm:$0xff]   ;;  %v32_v53 = vld [vmem:[%s1895_s0 + $0x20] sm:$0xff]  ;;  %v1421_v59 = vld [vmem:[%s1898_s3 + $0x68] sm:$0xff]  }
  0x5e   :  { %1213 = vmatprep.subr.bf16.mxu1 %v1413_v33  ;;  %v39_v54 = vpack.c.bf16 %v32_v53, %v32_v53  ;;  %v1417_v55 = vld [vmem:[%s1898_s3 + $0x58] sm:$0xff]   ;;  %v1419_v57 = vld [vmem:[%s1898_s3 + $0x60] sm:$0xff]   ;;  %v1422_v60 = vld [vmem:[%s1898_s3 + $0x28] sm:$0xff]  }
  0x5f   :  { %743 = vmatpush1.bf16.msra.mxu0 %v1363_v32  ;;  %v1418_v56 = vld [vmem:[%s1898_s3 + $0x18] sm:$0xff]   ;;  %v1420_v58 = vld [vmem:[%s1898_s3 + $0x20] sm:$0xff]   ;;  %v1423_v61 = vld [vmem:[%s1898_s3 + $0x70] sm:$0xff]  }
  0x60   :  { %744 = vmatprep.subr.bf16.mxu0 %v1371_v34  ;;  %v1424_v62 = vld [vmem:[%s1898_s3 + $0x30] sm:$0xff]   ;;  %v1425_v63 = vld [vmem:[%s1898_s3 + $0x78] sm:$0xff]   ;;  %v140_v13 = vld [vmem:[%s1897_s2] sm:$0x3] }
  0x61   :  { %1214 = vmatpush3.bf16.msra.mxu1 %v1414_v35  ;;  %v1426_v0 = vld [vmem:[%s1898_s3 + $0x38] sm:$0xff]   ;;  %v145_v15 = vrot.slane %v140_v13, %v144_v12  ;;  %v149_v16 = vrot.slane %v140_v13, %v148_v14  ;;  %v1427_v30 = vld [vmem:[%s1900_s5] sm:$0xff]   ;;  %v1428_v32 = vld [vmem:[%s1900_s5 + $0x8] sm:$0xff]  }
  0x62   :  { %1215 = vmatprep.subr.bf16.mxu1 %v1415_v37  ;;  %v1429_v33 = vld [vmem:[%s1900_s5 + $0x10] sm:$0xff]   ;;  %v1430_v34 = vld [vmem:[%s1900_s5 + $0x18] sm:$0xff]   ;;  %s1458_s5 = smov [#allocation2]  }
  0x63   :  { %745 = vmatpush1.bf16.msra.mxu0 %v1369_v36  ;;  %v1188_v36 = vld [vmem:[%s1899_s4] ss:$0 sm:$0xff]  ;;  %s1081_s0 = sshll.u32 %s1458_s5, 4  ;;  %s1082_s0 = int_to_ptr.vmem [resolvable:$true] %s1081_s0 }
  0x64   :  { %746 = vmatprep.subr.bf16.mxu0 %v1377_v38  ;;  %s1431_s4 = scalar_lea.vmem %s1082_s0, 128  ;;  %p1436_p1 = scmp.lt.s32.totalorder %s1082_s0, %s1082_s0 }
  0x65   :  { %1216 = vmatpush3.bf16.msra.mxu1 %v1416_v39  ;;  %p1432_p0 = scmp.ne.s32.totalorder %s1082_s0, %s1431_s4  ;;  %p1437_p2 = scmp.lt.s32.totalorder %s1431_s4, %s1431_s4 }
  0x66   :  { %1217 = vmatprep.subr.bf16.mxu1 %v1417_v55 }
  0x67   :  { %747 = vmatpush1.bf16.msra.mxu0 %v1375_v40  ;;  %p1438_p3 = por %p1437_p2, %p1436_p1 }
  0x68   :  { %748 = vmatprep.subr.bf16.mxu0 %v1383_v41 }
  0x69   :  { %1218 = vmatpush3.bf16.msra.mxu1 %v1418_v56  ;;  %p1439_p4 = pnand %p1438_p3, %p1432_p0 }
  0x6a   :  { %1219 = vmatprep.subr.bf16.mxu1 %v1419_v57 }
  0x6b   :  { %749 = vmatpush1.bf16.msra.mxu0 %v1381_v42 }
  0x6c   :  { %750 = vmatprep.subr.bf16.mxu0 %v1389_v43 }
  0x6d   :  { %1220 = vmatpush3.bf16.msra.mxu1 %v1420_v58 }
  0x6e   :  { %1221 = vmatprep.subr.bf16.mxu1 %v1421_v59 }
  0x6f   :  { %751 = vmatpush1.bf16.msra.mxu0 %v1387_v44  ;;  %v1205_v44 = vld [vmem:[%s1901_s6] ss:$0 sm:$0xff] }
  0x70   :  { %752 = vmatprep.subr.bf16.mxu0 %v1395_v45 }
  0x71   :  { %1222 = vmatpush3.bf16.msra.mxu1 %v1422_v60 }
  0x72   :  { %1223 = vmatprep.subr.bf16.mxu1 %v1423_v61 }
  0x73   :  { %753 = vmatpush1.bf16.msra.mxu0 %v1393_v46 }
  0x74   :  { %754 = vmatprep.subr.bf16.mxu0 %v1401_v47 }
  0x75   :  { %1224 = vmatpush3.bf16.msra.mxu1 %v1424_v62 }
  0x76   :  { %1225 = vmatprep.subr.bf16.mxu1 %v1425_v63 }
  0x77   :  { %755 = vmatpush1.bf16.msra.mxu0 %v1399_v48 }
  0x78   :  { %756 = vmatprep.subr.bf16.mxu0 %v1404_v49 }
  0x79   :  { %1226 = vmatpush3.bf16.msra.mxu1 %v1426_v0 }
  0x7a   :  { %1238 = vmatprep.subr.bf16.mxu1 %v1456_v1 }
  0x7b   :  { %757 = vmatpush1.bf16.msra.mxu0 %v1402_v50 }
  0x7c   :  { %758 = vmatprep.subr.bf16.mxu0 %v1410_v51 }
  0x7f   :  { %759 = vmatpush1.bf16.msra.mxu0 %v1408_v52 }
  0x82   :  { %761 = vmatmul.mubr.bf16.vlgmr.msra.gmra.mrb[0].mxu0 %v39_v54 }
 0x127   :  { %v680_v2 = vpop.f32.mrb[0].mxu1 }
 0x128   :  { %v682_v3 = vpop.f32.mrb[1].mxu1  ;;  %v681_v17 = vadd.f32 %v680_v2, %v145_v15 }
 0x129   :  { %v684_v4 = vpop.f32.mrb[2].mxu1  ;;  %v683_v18 = vadd.f32 %v682_v3, %v149_v16 }
 0x12a   :  { %v685_v5 = vpop.f32.mrb[3].mxu1 }
 0x12f   :  { %v803_v6 = vpop.f32.mrb[4].mxu1 }
 0x130   :  { %v805_v7 = vpop.f32.mrb[5].mxu1 }
 0x131   :  { %v807_v8 = vpop.f32.mrb[6].mxu1 }
 0x132   :  { %v808_v9 = vpop.f32.mrb[7].mxu1 }
 0x155   :  { %v762_v19 = vpop.f32.mrb[0].mxu0 }
 0x156   :  { %v1251_v20 = vadd.f32 %v762_v19, %v681_v17  ;;  %v764_v21 = vpop.f32.mrb[1].mxu0 }
 0x157   :  { %v1254_v22 = vadd.f32 %v764_v21, %v683_v18  ;;  %v766_v23 = vpop.f32.mrb[2].mxu0 }
 0x158   :  { %v1252_v24 = vadd.f32 %v1251_v20, %v803_v6  ;;  %v767_v25 = vpop.f32.mrb[3].mxu0 }
 0x159   :  { %v1255_v26 = vadd.f32 %v1254_v22, %v805_v7 }
 0x15a   :  { %v810_v27 = vmax.f32 %v1252_v24, 0.0 }
 0x15b   :  { %v811_v28 = vmax.f32 %v1255_v26, 0.0 }
 0x15c   :  { %v812_v31 = vpack.c.bf16 %v810_v27, %v810_v27 }
 0x15d   :  { %v813_v29 = vpack.c.bf16 %v811_v28, %v811_v28 }
 0x15f   :  { %981 = vmatprep.mubr.bf16.mxu1 %v813_v29 }
 0x160   :  { %982 = vmatmul.mubr.bf16.vlgmr.msra.gmra.mrb[8].mxu1 %v812_v31 }
 0x161   :  { %1239 = vmatpush3.bf16.msra.mxu1 %v1427_v30  ;;  %1246 = vmatprep.mubr.msk.bf16.mxu1 %vm1457_vm1, %v1456_v1 }
 0x162   :  { %1240 = vmatprep.subr.bf16.mxu1 %v1456_v1 }
 0x165   :  { %1241 = vmatpush3.bf16.msra.mxu1 %v1428_v32 }
 0x166   :  { %1242 = vmatprep.subr.bf16.mxu1 %v1456_v1 }
 0x169   :  { %1243 = vmatpush3.bf16.msra.mxu1 %v1429_v33 }
 0x16a   :  { %1244 = vmatprep.subr.bf16.mxu1 %v1456_v1 }
 0x16d   :  { %1245 = vmatpush3.bf16.msra.mxu1 %v1430_v34 }
 0x233   :  { %v1227_v35 = vpop.f32.mrb[8].mxu1 }
 0x234   :  { %v1228_v37 = vpop.f32.mrb[9].mxu1 }
 0x235   :  { %v1229_v38 = vadd.f32 %v1228_v37, %v1227_v35  ;;  %v1230_v39 = vpop.f32.mrb[10].mxu1 }
 0x236   :  { %v1231_v40 = vpop.f32.mrb[11].mxu1 }
 0x237   :  { %v984_v41 = vadd.f32 %v1229_v38, %v1188_v36 }
 0x239   :  { %v989_v42 = vmax.f32 %v984_v41, 0.0 }
 0x23b   :  { %v990_v43 = vpack.c.bf16 %v989_v42, %v989_v42 }
 0x23d   :  { %1247 = vmatmul.mubr.msk.bf16.vlgmr.msra.gmra.mrb[12].mxu1 %vm1030_vm2, %v990_v43 }
 0x310   :  { %v1068_v45 = vpop.f32.mrb[12].mxu1 }
 0x311   :  { %v1069_v46 = vadd.f32 %v1205_v44, %v1068_v45  ;;  %v1248_v47 = vpop.f32.mrb[13].mxu1 }
 0x312   :  { %v1071_v48 = vpop.f32.mrb[14].mxu1 }
 0x313   :  { %1074 = vst [vmem:[#allocation2] sm:$0xff] %v1069_v46  ;;  %v1249_v49 = vpop.f32.mrb[15].mxu1 }
 0x314   :  { %1442 = shalt.err (!%p1439_p4)
}
 0x315   :  { %s1443_s6 = scalar_lea.hbm %s1902_s7, 128 }
 0x316   :  { %p1444_p5 = scmp.ne.s32.totalorder %s1902_s7, %s1443_s6  ;;  %p1447_p6 = scmp.lt.u32.totalorder %s1443_s6, %s1902_s7 }
 0x318   :  { %p1449_p7 = pnand %p1447_p6, %p1444_p5 }
 0x31a   :  { %1452 = shalt.err (!%p1449_p7)
}
 0x31b   :  { %1084 = dma.vmem_to_hbm [thread:$0]  %s1082_s0, 128, %s1902_s7, [#allocation3]  }
 0x31c   :  { %1453 = dma.done.wait [#allocation3], 128  }
 0x31d   :  { %1454 = vsyncadd [#allocation3], 4294967168 }
 0x31e   :  { %1088 = vsyncpa [#allocation3], 1 }

</bundles_post_ra>
